<compile_context>
chip_gen: v7x
topology: tpu7x:2x2x1
jax: 0.10.0
libtpu: 0.0.40
codegen_flags: <defaults>
</compile_context>

<pallas_src>
import math

import jax
import jax.numpy as jnp
from jax.experimental import pallas as pl
from jax.experimental.pallas import tpu as pltpu

LN_EPS = 1e-5


# --------------------------------------------------------------------------- #
# Pallas kernel: fused LayerNorm (affine pre-folded) + Linear                  #
# --------------------------------------------------------------------------- #
def _spt_kernel(x_ref, add_ref, w_ref, o_ref):
    """Fused LN + CoordLinear (coords/bias/affine pre-folded).

    x_ref  : (TM, patch_dim)  patch-merged tokens
    add_ref: (TM, dim)        coords @ W_coord + beta @ W_feat + bias
    w_ref  : (patch_dim, dim) gamma[:, None] * W_feat
    o_ref  : (TM, dim)
    """
    x = x_ref[...].astype(jnp.float32)
    # LayerNorm statistics over the feature (lane) dimension - biased variance,
    # fp32 accumulation, eps inside the rsqrt, matching torch.nn.LayerNorm.
    mean = jnp.mean(x, axis=-1, keepdims=True)
    centered = x - mean
    var = jnp.mean(centered * centered, axis=-1, keepdims=True)
    xn = centered * jax.lax.rsqrt(var + LN_EPS)

    out = jnp.dot(xn, w_ref[...], preferred_element_type=jnp.float32)
    o_ref[...] = (out + add_ref[...]).astype(o_ref.dtype)


# --------------------------------------------------------------------------- #
# XLA glue: channels-last PatchShifting + patch merge, coordinate grid         #
# --------------------------------------------------------------------------- #
def _patch_shift_and_merge(x, in_dim, merging_size):
    """Channels-last PatchShifting + 'b c (h p1) (w p2) -> b (h w) (p1 p2 c)'.

    Working channels-last means:
      - no NHWC->NCHW transpose of the input tokens,
      - channel concat becomes a contiguous last-axis concat,
      - the patch rearrange is a single cheap (h<->p1-block) transpose with a
        contiguous (p2, 5*in_dim) minor chunk.
    The resulting feature order per patch is (p1, p2, c) with c fastest -
    identical to the PyTorch Rearrange.
    """
    B, N, d = x.shape
    Hi = Wi = int(math.sqrt(N))
    x_img = x.reshape(B, Hi, Wi, d)                      # channels-last, no transpose

    shift = int(merging_size * (1 / 2))
    s2 = 2 * shift
    xp = jnp.pad(x_img, ((0, 0), (shift, shift), (shift, shift), (0, 0)))
    x_lu = xp[:, :-s2, :-s2, :]
    x_ru = xp[:, :-s2, s2:, :]
    x_lb = xp[:, s2:, :-s2, :]
    x_rb = xp[:, s2:, s2:, :]
    # Same channel-group order as torch.cat([x, lu, ru, lb, rb], dim=1).
    x_cat = jnp.concatenate([x_img, x_lu, x_ru, x_lb, x_rb], axis=-1)  # (B,Hi,Wi,5d)

    C5 = 5 * in_dim
    p = merging_size
    hp, wp = Hi // p, Wi // p
    t = x_cat.reshape(B, hp, p, wp, p, C5)
    t = t.transpose(0, 1, 3, 2, 4, 5)                    # b h w p1 p2 c
    t = t.reshape(B, hp * wp, p * p * C5)
    return t, hp, wp


def _addcoords(B, H, W):
    """Matches ShiftedPatchTokenization.addcoords exactly (token = h*W + w)."""
    hh = jnp.arange(H, dtype=jnp.float32)
    ww = jnp.arange(W, dtype=jnp.float32)
    xx = 2.0 * hh / (H - 1) - 1.0                        # varies with h
    yy = 2.0 * ww / (W - 1) - 1.0                        # varies with w
    xx_grid = jnp.broadcast_to(xx[:, None], (H, W))
    yy_grid = jnp.broadcast_to(yy[None, :], (H, W))
    coords = jnp.stack([xx_grid, yy_grid], axis=-1).reshape(H * W, 2)
    return jnp.broadcast_to(coords[None], (B, H * W, 2))


def _pick_row_tile(M, tm):
    """Choose the row tile: big (HBM-bound), multiple of 8, >=4 grid steps."""
    if tm is None:
        tm = min(1024, max(8, (((M + 3) // 4) // 8) * 8))
    tm = max(8, (tm // 8) * 8)            # sublane multiple
    tm = min(tm, ((M + 7) // 8) * 8)      # never exceed (rounded-up) M
    return tm


# --------------------------------------------------------------------------- #
# Full forward                                                                 #
# --------------------------------------------------------------------------- #
def shifted_patch_tokenization(x, params, *, in_dim, dim, merging_size=2, tm=None):
    """Full forward. x: (B, N, in_dim). Returns (out (B,P,dim), coords (B,P,2))."""
    B = x.shape[0]
    tokens, hp, wp = _patch_shift_and_merge(x, in_dim, merging_size)
    patch_dim = in_dim * 5 * merging_size ** 2
    P = hp * wp
    coords = _addcoords(B, hp, wp)

    # ---- fold LN affine + coord/bias terms into the matmul operands (XLA) ----
    gamma = params["ln_gamma"].astype(jnp.float32)          # (patch_dim,)
    beta = params["ln_beta"].astype(jnp.float32)             # (patch_dim,)
    w_feat = params["w_feat"].astype(jnp.float32)            # (patch_dim, dim)
    w_coord = params["w_coord"].astype(jnp.float32)          # (2, dim)
    bias = params["bias"].astype(jnp.float32)                # (dim,)

    w_fused = gamma[:, None] * w_feat                                  # (patch_dim, dim)
    add_const = beta @ w_feat + bias                                   # (dim,)
    add = coords.reshape(B * P, 2).astype(jnp.float32) @ w_coord + add_const  # (M, dim)

    tok_flat = tokens.reshape(B * P, patch_dim)
    M = B * P

    # ---- tiling: pad token count up to a tile multiple (no divisibility assert)
    tm_eff = _pick_row_tile(M, tm)
    Mp = pl.cdiv(M, tm_eff) * tm_eff
    if Mp != M:
        pad = Mp - M
        # zero rows LayerNorm to zero (var=0 -> 0 * rsqrt(eps) = 0): no NaNs.
        tok_flat = jnp.pad(tok_flat, ((0, pad), (0, 0)))
        add = jnp.pad(add, ((0, pad), (0, 0)))
    grid = Mp // tm_eff

    out_flat = pl.pallas_call(
        _spt_kernel,
        out_shape=jax.ShapeDtypeStruct((Mp, dim), jnp.float32),
        grid_spec=pltpu.PrefetchScalarGridSpec(
            num_scalar_prefetch=0,
            grid=(grid,),
            in_specs=[
                pl.BlockSpec((tm_eff, patch_dim), lambda i: (i, 0)),   # tokens
                pl.BlockSpec((tm_eff, dim), lambda i: (i, 0)),         # additive term
                pl.BlockSpec((patch_dim, dim), lambda i: (0, 0)),      # fused weight
            ],
            out_specs=pl.BlockSpec((tm_eff, dim), lambda i: (i, 0)),
        ),
        compiler_params=pltpu.CompilerParams(
            dimension_semantics=("parallel",)),
    )(tok_flat, add, w_fused)

    out = out_flat[:M].reshape(B, P, dim)
    return out, coords


# --------------------------------------------------------------------------- #
# Pure-JAX reference mirroring the PyTorch module (NCHW path, unfused math)    #
# --------------------------------------------------------------------------- #
def _reference(x, params, *, in_dim, dim, merging_size=2):
    B, N, d = x.shape
    Hi = Wi = int(math.sqrt(N))
    x_img = x.reshape(B, Hi, Wi, d).transpose(0, 3, 1, 2)    # NCHW like torch
    shift = int(merging_size * (1 / 2))
    s2 = 2 * shift
    xp = jnp.pad(x_img, ((0, 0), (0, 0), (shift, shift), (shift, shift)))
    x_cat = jnp.concatenate(
        [x_img, xp[:, :, :-s2, :-s2], xp[:, :, :-s2, s2:],
         xp[:, :, s2:, :-s2], xp[:, :, s2:, s2:]], axis=1)    # (B,5d,Hi,Wi)
    C5 = 5 * in_dim
    p = merging_size
    hp, wp = Hi // p, Wi // p
    t = x_cat.reshape(B, C5, hp, p, wp, p).transpose(0, 2, 4, 3, 5, 1)
    t = t.reshape(B, hp * wp, p * p * C5)
    coords = _addcoords(B, hp, wp)

    mean = t.mean(-1, keepdims=True)
    var = ((t - mean) ** 2).mean(-1, keepdims=True)
    ln = (t - mean) / jnp.sqrt(var + LN_EPS)
    ln = ln * params["ln_gamma"] + params["ln_beta"]
    w_full = jnp.concatenate([params["w_feat"], params["w_coord"]], axis=0)
    out = jnp.concatenate([ln, coords], axis=-1) @ w_full + params["bias"]
    return out, coords


if __name__ == "__main__":
    # Small shapes consistent with the module:
    #   B=2, in_dim=4, 16x16 input token grid (N=256), merging_size=2, dim=32
    #   -> patch_dim = 4*5*4 = 80, num_patches = 64, coords grid = 8x8
    B, in_dim, Hi, dim, merging_size = 2, 4, 16, 32, 2
    N = Hi * Hi

    key = jax.random.PRNGKey(0)
    kx, kg, kb, kwf, kwc, kbi = jax.random.split(key, 6)

    patch_dim = in_dim * 5 * merging_size ** 2
    x = jax.random.normal(kx, (B, N, in_dim), dtype=jnp.float32)
    params = {
        "ln_gamma": 1.0 + 0.1 * jax.random.normal(kg, (patch_dim,), jnp.float32),
        "ln_beta": 0.1 * jax.random.normal(kb, (patch_dim,), jnp.float32),
        "w_feat": 0.05 * jax.random.normal(kwf, (patch_dim, dim), jnp.float32),
        "w_coord": 0.05 * jax.random.normal(kwc, (2, dim), jnp.float32),
        "bias": 0.05 * jax.random.normal(kbi, (dim,), jnp.float32),
    }

    # Default (auto) row tile.
    out, coords = shifted_patch_tokenization(
        x, params, in_dim=in_dim, dim=dim, merging_size=merging_size)
    out = jax.block_until_ready(out)
    coords = jax.block_until_ready(coords)

    ref_out, ref_coords = _reference(
        x, params, in_dim=in_dim, dim=dim, merging_size=merging_size)

    assert out.shape == (B, N // merging_size ** 2, dim)
    assert coords.shape == (B, N // merging_size ** 2, 2)
    assert jnp.allclose(out, ref_out, atol=1e-4, rtol=1e-4)
    assert jnp.allclose(coords, ref_coords, atol=1e-6)

    # Explicit non-dividing tile: exercises the padded-tail / multi-step path.
    out2, _ = shifted_patch_tokenization(
        x, params, in_dim=in_dim, dim=dim, merging_size=merging_size, tm=48)
    out2 = jax.block_until_ready(out2)
    assert jnp.allclose(out2, ref_out, atol=1e-4, rtol=1e-4)

    print("KERNEL_OK")
</pallas_src>

<mosaic_0001>
module attributes {stable_mosaic.version = 11 : i64} {
  func.func @_spt_kernel(%arg0: i32, %arg1: memref<32x80xf32, #tpu.memory_space<vmem>>, %arg2: memref<32x32xf32, #tpu.memory_space<vmem>>, %arg3: memref<80x32xf32, #tpu.memory_space<vmem>>, %arg4: memref<32x32xf32, #tpu.memory_space<vmem>>) attributes {dimension_semantics = [#tpu.dimension_semantics<parallel>], iteration_bounds = array<i64: 4>, scalar_prefetch = 0 : i64, scratch_operands = 0 : i64, tpu.core_type = #tpu.core_type<tc>, window_params = [{transform_indices = @transform_0, window_bounds = array<i64: 32, 80>}, {transform_indices = @transform_1, window_bounds = array<i64: 32, 32>}, {pipeline_mode = #tpu.pipeline_mode<synchronous>, transform_indices = @transform_2, window_bounds = array<i64: 80, 32>}, {transform_indices = @transform_3, window_bounds = array<i64: 32, 32>}]} {
    %c0 = arith.constant 0 : index
    %c0_0 = arith.constant 0 : index
    %0 = vector.load %arg1[%c0, %c0_0] : memref<32x80xf32, #tpu.memory_space<vmem>>, vector<32x80xf32>
    %cst = arith.constant dense<0.000000e+00> : vector<32xf32>
    %1 = vector.multi_reduction <add>, %0, %cst [1] : vector<32x80xf32> to vector<32xf32>
    %2 = vector.shape_cast %1 : vector<32xf32> to vector<32x1xf32>
    %cst_1 = arith.constant 8.000000e+01 : f32
    %3 = vector.broadcast %cst_1 : f32 to vector<32x1xf32>
    %4 = arith.divf %2, %3 : vector<32x1xf32>
    %5 = vector.broadcast %4 : vector<32x1xf32> to vector<32x80xf32>
    %6 = arith.subf %0, %5 : vector<32x80xf32>
    %7 = arith.mulf %6, %6 : vector<32x80xf32>
    %cst_2 = arith.constant dense<0.000000e+00> : vector<32xf32>
    %8 = vector.multi_reduction <add>, %7, %cst_2 [1] : vector<32x80xf32> to vector<32xf32>
    %9 = vector.shape_cast %8 : vector<32xf32> to vector<32x1xf32>
    %cst_3 = arith.constant 8.000000e+01 : f32
    %10 = vector.broadcast %cst_3 : f32 to vector<32x1xf32>
    %11 = arith.divf %9, %10 : vector<32x1xf32>
    %cst_4 = arith.constant 9.99999974E-6 : f32
    %12 = vector.broadcast %cst_4 : f32 to vector<32x1xf32>
    %13 = arith.addf %11, %12 : vector<32x1xf32>
    %14 = math.rsqrt %13 : vector<32x1xf32>
    %15 = vector.broadcast %14 : vector<32x1xf32> to vector<32x80xf32>
    %16 = arith.mulf %6, %15 : vector<32x80xf32>
    %c0_5 = arith.constant 0 : index
    %c0_6 = arith.constant 0 : index
    %17 = vector.load %arg3[%c0_5, %c0_6] : memref<80x32xf32, #tpu.memory_space<vmem>>, vector<80x32xf32>
    %cst_7 = arith.constant dense<0.000000e+00> : vector<32x32xf32>
    %18 = tpu.matmul %16, %17, %cst_7 {dimension_numbers = #tpu.dot_dimension_numbers<[1], [0], [0], [1], [0, 0, 1, 1], [], []>} : vector<32x80xf32>, vector<80x32xf32>, vector<32x32xf32> -> vector<32x32xf32>
    %c0_8 = arith.constant 0 : index
    %c0_9 = arith.constant 0 : index
    %19 = vector.load %arg2[%c0_8, %c0_9] : memref<32x32xf32, #tpu.memory_space<vmem>>, vector<32x32xf32>
    %20 = arith.addf %18, %19 : vector<32x32xf32>
    %c0_10 = arith.constant 0 : index
    %c0_11 = arith.constant 0 : index
    %21 = vector.load %arg4[%c0_10, %c0_11] : memref<32x32xf32, #tpu.memory_space<vmem>>, vector<32x32xf32>
    tpu.vector_store %arg4[%c0_10, %c0_11], %20 {strides = array<i32>} : memref<32x32xf32, #tpu.memory_space<vmem>>, vector<32x32xf32>,
    return
  }
  func.func @transform_0(%arg0: i32) -> (i32, i32) {
    %c0_i32 = arith.constant 0 : i32
    %c0_i32_0 = arith.constant 0 : i32
    return %arg0, %c0_i32 : i32, i32
  }
  func.func @transform_1(%arg0: i32) -> (i32, i32) {
    %c0_i32 = arith.constant 0 : i32
    %c0_i32_0 = arith.constant 0 : i32
    return %arg0, %c0_i32 : i32, i32
  }
  func.func @transform_2(%arg0: i32) -> (i32, i32) {
    %c0_i32 = arith.constant 0 : i32
    %c0_i32_0 = arith.constant 0 : i32
    %c0_i32_1 = arith.constant 0 : i32
    return %c0_i32, %c0_i32_0 : i32, i32
  }
  func.func @transform_3(%arg0: i32) -> (i32, i32) {
    %c0_i32 = arith.constant 0 : i32
    %c0_i32_0 = arith.constant 0 : i32
    return %arg0, %c0_i32 : i32, i32
  }
}

</mosaic_0001>

<bundles_post_ra>
// kernel: tpu_custom_call.1
= control target key start
LH: loop header
LB: loop body
LE: loop exit
PB: predicated region body
PF: predicated region fallthrough
CT: control target
= control target key end

     0   :  { %s569_s12 = smov 0   ;;  %s656_s0 = inlined_call_operand.vmem [shape: f32[128,80], index: 0, kind: input, shape index: {}]   ;;  %s657_s1 = inlined_call_operand.vmem [shape: f32[128,32], index: 1, kind: input, shape index: {}]   ;;  %s658_s2 = inlined_call_operand.vmem [shape: f32[80,32], index: 2, kind: input, shape index: {}]   ;;  %s659_s3 = inlined_call_operand.vmem [shape: f32[128,32], index: 3, kind: output, shape index: {}]  }
   0x1 LB: > { %s438_s13 = sadd.s32 4294967295, %s547_s12   ;;  %p442_p0 = scmp.ge.s32.totalorder %s547_s12, 1  ;;  %s547_s12 = sphi %s569_s12, %s13_s12  }
   0x2   : > { %p149_p1 = scmp.lt.s32.totalorder %s547_s12, 5 }
   0x4   : > { %p150_p2 = pnand %p442_p0, %p149_p1 }
   0x5   : > { %s443_s14 = sshll.u32 (!%p150_p2), %s438_s13, 2  ;;  %vm200_vm0 = vcmask (!%p150_p2), 654336   ;;  %v254_v28 = vld [vmem:[%s658_s2] sm:$0xff] (!%p150_p2)  ;;  %v255_v29 = vld [vmem:[%s658_s2 + $0x8] sm:$0xff] (!%p150_p2)  ;;  %v256_v31 = vld [vmem:[%s658_s2 + $0x10] sm:$0xff] (!%p150_p2)  ;;  %vm365_vm1 = vcmask (!%p150_p2), 261120  }
   0x6   : > { %153 = sbr.rel (%p150_p2) target bundleno = 550 (0x226), region = 32  ;;  %p179_p3 = scmp.lt.s32.totalorder (!%p150_p2), %s443_s14, 15  ;;  %v495_v30 = vpack.c.bf16 (!%p150_p2), %v255_v29, %v254_v28  ;;  %v257_v32 = vld [vmem:[%s658_s2 + $0x18] sm:$0xff] (!%p150_p2)  ;;  %v258_v34 = vld [vmem:[%s658_s2 + $0x20] sm:$0xff] (!%p150_p2)  ;;  %v259_v35 = vld [vmem:[%s658_s2 + $0x28] sm:$0xff] (!%p150_p2) }
   0x7   : > { %v499_v33 = vpack.c.bf16 (!%p150_p2), %v257_v32, %v256_v31  ;;  %v503_v36 = vpack.c.bf16 (!%p150_p2), %v259_v35, %v258_v34  ;;  %v260_v37 = vld [vmem:[%s658_s2 + $0x30] sm:$0xff] (!%p150_p2)  ;;  %v261_v38 = vld [vmem:[%s658_s2 + $0x38] sm:$0xff] (!%p150_p2)  ;;  %v262_v40 = vld [vmem:[%s658_s2 + $0x40] sm:$0xff] (!%p150_p2) }
   0x8   : > { %496 = vmatprep.subr.bf16.mxu0 (!%p150_p2), %v495_v30  ;;  %515 = vmatprep.subr.bf16.mxu1 (!%p150_p2), %v495_v30  ;;  %v507_v39 = vpack.c.bf16 (!%p150_p2), %v261_v38, %v260_v37  ;;  %v263_v41 = vld [vmem:[%s658_s2 + $0x48] sm:$0xff] (!%p150_p2) }
   0x9   : > { %498 = vmatpush3.bf16.msra.mxu0 (!%p150_p2), %v495_v30  ;;  %520 = vmatpush3.bf16.msra.mxu1 (!%p150_p2), %v495_v30  ;;  %v511_v42 = vpack.c.bf16 (!%p150_p2), %v263_v41, %v262_v40 }
   0xa   : > { %500 = vmatprep.subr.bf16.mxu0 (!%p150_p2), %v499_v33  ;;  %516 = vmatprep.subr.bf16.mxu1 (!%p150_p2), %v499_v33 }
   0xd   : > { %s661_s14 = smov (!%p179_p3, %s443_s14), 15  ;;  %502 = vmatpush3.bf16.msra.mxu0 %v499_v33  ;;  %521 = vmatpush3.bf16.msra.mxu1 %v499_v33 }
   0xe   : > { %s577_s15 = sshll.u32 %s661_s14, 3  ;;  %504 = vmatprep.subr.bf16.mxu0 %v503_v36  ;;  %517 = vmatprep.subr.bf16.mxu1 %v503_v36 }
   0xf   : > { %s182_s18 = scalar_lea.vmem %s656_s0, %s577_s15  ;;  %s188_s16 = scalar_lea.vmem %s657_s1, %s577_s15 }
  0x10   : > { %v196_v0 = vld [vmem:[%s182_s18] sm:$0xff]  ;;  %v197_v1 = vld [vmem:[%s182_s18 + $0x8] sm:$0xff]  ;;  %v198_v2 = vld [vmem:[%s182_s18 + $0x10] sm:$0xff]  ;;  %s194_s19 = scalar_lea.vmem %s659_s3, %s577_s15 }
  0x11   : > { %v201_v3 = vsel %vm200_vm0, %v196_v0, 0.0  ;;  %v204_v4 = vsel %vm200_vm0, %v197_v1, 0.0  ;;  %v199_v5 = vld [vmem:[%s182_s18 + $0x18] sm:$0xff]  ;;  %v207_v6 = vsel %vm200_vm0, %v198_v2, 0.0  ;;  %506 = vmatpush3.bf16.msra.mxu0 %v503_v36  ;;  %522 = vmatpush3.bf16.msra.mxu1 %v503_v36  ;;  %v265_v63 = vld [vmem:[%s188_s16 + $0x8] sm:$0xff] }
  0x12   : > { %202 = vadd.xlane.f32.xlu0 %v201_v3  ;;  %205 = vadd.xlane.f32.xlu1 %v204_v4  ;;  %v210_v7 = vsel %vm200_vm0, %v199_v5, 0.0  ;;  %v267_v4 = vld [vmem:[%s188_s16 + $0x18] sm:$0xff] }
  0x13   : > { %508 = vmatprep.subr.bf16.mxu0 %v507_v39  ;;  %518 = vmatprep.subr.bf16.mxu1 %v507_v39 }
  0x15   : > { %510 = vmatpush3.bf16.msra.mxu0 %v507_v39  ;;  %523 = vmatpush3.bf16.msra.mxu1 %v507_v39 }
  0x16   : > { %208 = vadd.xlane.f32.xlu0 %v207_v6  ;;  %211 = vadd.xlane.f32.xlu1 %v210_v7  ;;  %v266_v6 = vld [vmem:[%s188_s16 + $0x10] sm:$0xff] }
  0x17   : > { %512 = vmatprep.subr.bf16.mxu0 %v511_v42  ;;  %519 = vmatprep.subr.bf16.mxu1 %v511_v42 }
  0x19   : > { %514 = vmatpush3.bf16.msra.mxu0 %v511_v42  ;;  %524 = vmatpush3.bf16.msra.mxu1 %v511_v42 }
  0x9f   : > { %v203_v8 = vpop.xlane.xlu0 %202  ;;  %v206_v9 = vpop.xlane.xlu1 %205 }
  0xa0   : > { %v214_v10 = vmul.f32 0.0125, %v203_v8  ;;  %v215_v11 = vmul.f32 0.0125, %v206_v9 }
  0xa2   : > { %v587_v12 = vsub.f32 %v196_v0, %v214_v10  ;;  %v589_v13 = vsub.f32 %v197_v1, %v215_v11  ;;  %v264_v0 = vld [vmem:[%s188_s16] sm:$0xff] }
  0xa3   : > { %v209_v14 = vpop.xlane.xlu0 %208  ;;  %v212_v15 = vpop.xlane.xlu1 %211 }
  0xa4   : > { %v216_v16 = vmul.f32 0.0125, %v209_v14  ;;  %v217_v17 = vmul.f32 0.0125, %v212_v15  ;;  %v222_v18 = vmul.f32 %v587_v12, %v587_v12  ;;  %v223_v19 = vmul.f32 %v589_v13, %v589_v13 }
  0xa6   : > { %v595_v20 = vsub.f32 %v198_v2, %v216_v16  ;;  %v597_v21 = vsub.f32 %v199_v5, %v217_v17  ;;  %v226_v22 = vsel %vm200_vm0, %v222_v18, 0.0  ;;  %v229_v23 = vsel %vm200_vm0, %v223_v19, 0.0 }
  0xa7   : > { %227 = vadd.xlane.f32.xlu0 %v226_v22 }
  0xa8   : > { %v224_v24 = vmul.f32 %v595_v20, %v595_v20  ;;  %v225_v25 = vmul.f32 %v597_v21, %v597_v21 }
  0xaa   : > { %v232_v26 = vsel %vm200_vm0, %v224_v24, 0.0  ;;  %v235_v27 = vsel %vm200_vm0, %v225_v25, 0.0 }
  0xab   : > { %230 = vadd.xlane.f32.xlu0 %v229_v23  ;;  %233 = vadd.xlane.f32.xlu1 %v232_v26 }
  0xaf   : > { %236 = vadd.xlane.f32.xlu1 %v235_v27 }
 0x134   : > { %v228_v43 = vpop.xlane.xlu0 %227 }
 0x135   : > { %v238_v44 = vmul.f32 0.0125, %v228_v43 }
 0x137   : > { %v242_v45 = vadd.f32 1e-05, %v238_v44 }
 0x138   : > { %v234_v46 = vpop.xlane.xlu1 %233  ;;  %v231_v47 = vpop.xlane.xlu0 %230 }
 0x139   : > { %533 = vrsqrt.f32 %v242_v45  ;;  %v240_v48 = vmul.f32 0.0125, %v234_v46  ;;  %v239_v49 = vmul.f32 0.0125, %v231_v47 }
 0x13b   : > { %v244_v50 = vadd.f32 1e-05, %v240_v48  ;;  %v243_v51 = vadd.f32 1e-05, %v239_v49 }
 0x13c   : > { %v237_v52 = vpop.xlane.xlu1 %236 }
 0x13d   : > { %535 = vrsqrt.f32 %v244_v50  ;;  %v241_v53 = vmul.f32 0.0125, %v237_v52 }
 0x13e   : > { %537 = vrsqrt.f32 %v243_v51 }
 0x13f   : > { %v245_v54 = vadd.f32 1e-05, %v241_v53 }
 0x141   : > { %539 = vrsqrt.f32 %v245_v54 }
 0x143   : > { %v534_v55 = vpop.eup %533 }
 0x144   : > { %v250_v56 = vmul.f32 %v534_v55, %v587_v12 }
 0x146   : > { %489 = vmatprep.mubr.msk.f32.mxu0 %vm200_vm0, %v250_v56 }
 0x147   : > { %v536_v57 = vpop.eup %535 }
 0x148   : > { %v538_v58 = vpop.eup %537  ;;  %v252_v59 = vmul.f32 %v536_v57, %v595_v20 }
 0x149   : > { %v251_v60 = vmul.f32 %v538_v58, %v589_v13 }
 0x14a   : > { %492 = vmatprep.mubr.msk.f32.mxu1 %vm200_vm0, %v252_v59 }
 0x14b   : > { %v540_v61 = vpop.eup %539  ;;  %490 = vmatmul.mubr.msk.f32.vlgmr.msra.gmra.mrb[0].mxu0 %vm200_vm0, %v251_v60 }
 0x14c   : > { %v253_v62 = vmul.f32 %v540_v61, %v597_v21 }
 0x14e   : > { %493 = vmatmul.mubr.msk.f32.vlgmr.msra.gmra.mrb[0].mxu1 %vm200_vm0, %v253_v62 }
 0x21e   : > { %v491_v1 = vpop.f32.mrb[0].mxu0 }
 0x21f   : > { %v352_v2 = vadd.f32 %v491_v1, %v265_v63  ;;  %v346_v3 = vpop.f32.mrb[1].mxu0 }
 0x220   : > { %v347_v5 = vadd.f32 %v346_v3, %v264_v0 }
 0x221   : > { %367 = vst.msk [vmem:[%s194_s19 + $0x8] sm:$0xff] %vm365_vm1, %v352_v2  ;;  %v494_v7 = vpop.f32.mrb[0].mxu1 }
 0x222   : > { %366 = vst.msk [vmem:[%s194_s19] sm:$0xff] %vm365_vm1, %v347_v5  ;;  %v362_v8 = vadd.f32 %v494_v7, %v267_v4  ;;  %v356_v9 = vpop.f32.mrb[1].mxu1 }
 0x223   : > { %v357_v10 = vadd.f32 %v356_v9, %v266_v6 }
 0x224   : > { %369 = vst.msk [vmem:[%s194_s19 + $0x18] sm:$0xff] %vm365_vm1, %v362_v8 }
 0x225   : > { %368 = vst.msk [vmem:[%s194_s19 + $0x10] sm:$0xff] %vm365_vm1, %v357_v10 }
 0x226 PF: > { %s13_s12 = sadd.s32 1, %s547_s12  }
 0x227   : > { %p10_p4 = scmp.ge.s32.totalorder %s13_s12, 6  }
 0x229   :  { %12 = sbr.rel (!%p10_p4) target bundleno = 1 (0x1), region = 65 }

</bundles_post_ra>
